<compile_context>
chip_gen: v5e
topology: v5e:2x2
jax: 0.10.0
libtpu: 0.0.40
codegen_flags: <defaults>
</compile_context>

<pallas_src>
import math

import numpy as np
import jax
import jax.numpy as jnp
from jax.experimental import pallas as pl
from jax.experimental.pallas import tpu as pltpu

SCALE_FACTOR = 2.0
MODE = "bilinear"
ALIGN_CORNERS = False


def _linear_taps(in_size: int, out_size: int):
    """Per-output 2-tap (index, weight) pairs for 1-D linear interpolation.

    Matches PyTorch bilinear, align_corners=False, recompute_scale_factor=True:
    scale = in/out, half-pixel src = (dst + 0.5)*scale - 0.5, negative src
    clamped to 0, i1 = min(i0 + 1, in_size - 1).
    """
    scale = in_size / out_size
    dst = np.arange(out_size, dtype=np.float64)
    src = np.maximum((dst + 0.5) * scale - 0.5, 0.0)
    i0 = np.clip(np.floor(src).astype(np.int64), 0, in_size - 1)
    i1 = np.minimum(i0 + 1, in_size - 1)
    frac = (src - i0).astype(np.float32)
    return (i0.astype(np.int32), i1.astype(np.int32),
            (1.0 - frac).astype(np.float32), frac.astype(np.float32))


def _linear_matrix_t(in_size: int, out_size: int, dtype) -> jnp.ndarray:
    """Pre-transposed (in_size, out_size) dense 1-D interpolation matrix."""
    i0, i1, w0, w1 = _linear_taps(in_size, out_size)
    m = np.zeros((out_size, in_size), dtype=np.float32)
    rows = np.arange(out_size)
    np.add.at(m, (rows, i0), w0)
    np.add.at(m, (rows, i1), w1)
    return jnp.asarray(m.T, dtype=dtype)          # (W_in, W_out)


def _h_coef_columns(h_in: int) -> np.ndarray:
    """Per-input-row blend coefficients for scale-2 H interpolation.

    out[2k]   = x[k] + c_up[k] * (x[k-1] - x[k])
    out[2k+1] = x[k] + c_dn[k] * (x[k+1] - x[k])
    with c = 0.25 in the interior and 0 at the clamped boundary rows
    (exactly the PyTorch half-pixel taps for scale_factor=2).
    """
    c_up = np.full((h_in,), 0.25, np.float32)
    c_up[0] = 0.0
    c_dn = np.full((h_in,), 0.25, np.float32)
    c_dn[h_in - 1] = 0.0
    return np.stack([c_up, c_dn], axis=1)         # (h_in, 2)


def _interp_kernel(ww_ref, hc_ref, x_ref, o_ref):
    """One block = `bb` whole planes, folded to (bb*H_in, W_in) rows."""
    m, _ = x_ref.shape
    w_out = ww_ref.shape[1]

    x = x_ref[...].astype(jnp.float32)                         # (m, w_in) f32

    # Neighbour rows via full-block sublane shifts.  Any garbage picked up at
    # plane-boundary rows is multiplied by a zero coefficient below.
    if m > 1:
        x_up = jnp.concatenate([x[:1, :], x[:-1, :]], axis=0)  # row r -> x[r-1]
        x_dn = jnp.concatenate([x[1:, :], x[-1:, :]], axis=0)  # row r -> x[r+1]
    else:
        x_up = x
        x_dn = x

    c_up = hc_ref[:, 0:1]                                      # (m, 1) f32
    c_dn = hc_ref[:, 1:2]

    even = x + c_up * (x_up - x)      # H-interp, even output rows (2k)
    odd = x + c_dn * (x_dn - x)       # H-interp, odd output rows (2k+1)

    # W-interp: folded MXU matmuls, f32 accumulation.
    ww = ww_ref[...]                                            # (w_in, w_out)
    even_o = jnp.dot(even, ww, preferred_element_type=jnp.float32)
    odd_o = jnp.dot(odd, ww, preferred_element_type=jnp.float32)

    # Folded-output layout: row (p*H_in + k), lanes [s*W_out:(s+1)*W_out] is
    # NCHW element (p, 2k+s, :), so these two lane-half stores realize the
    # even/odd row interleave with zero shuffle cost.
    o_ref[:, 0:w_out] = even_o.astype(o_ref.dtype)
    o_ref[:, w_out:2 * w_out] = odd_o.astype(o_ref.dtype)


def _pick_batch_planes(n_planes, h_in, w_in, w_out, itemsize):
    """Planes per grid step + requested VMEM limit (generation-aware)."""
    try:
        phys = int(getattr(pltpu.get_tpu_info(), "vmem_capacity_bytes", 0)) or 64 * 2**20
    except Exception:
        phys = 64 * 2**20                                   # conservative (v7x)
    vmem_limit = int(min(phys // 2, 64 * 2**20))            # 64 MiB on v5e/v6e, 32 MiB on v7x
    budget = int(vmem_limit * 0.7)                          # ~30% headroom under the limit

    def rpad(r, isz):                                       # sublane padding per dtype
        mult = (8 * 4) // isz                               # f32->8, bf16->16, int8->32
        return -(-r // mult) * mult

    def lpad(c):                                            # lane padding
        return -(-c // 128) * 128

    hp = rpad(h_in, itemsize)
    in_pp = 2 * hp * lpad(w_in) * itemsize                  # x block, double-buffered
    out_pp = 2 * hp * lpad(2 * w_out) * itemsize            # out block, double-buffered
    coef_pp = 2 * rpad(h_in, 4) * lpad(2) * 4               # coefficient columns, dbl-buffered
    work_pp = rpad(h_in, 4) * (6 * lpad(w_in) + 3 * lpad(w_out)) * 4  # in-kernel f32 temps
    per_plane = in_pp + out_pp + coef_pp + work_pp
    const = 2 * rpad(w_in, 4) * lpad(w_out) * 4             # ww_t block (f32, dbl-buffered)

    cap = max(1, (budget - const) // per_plane)
    # Keep the x block modest: DMA efficiency plateaus, and this bounds the
    # live f32 working set (per-block "M-tiling" of the matmul temporaries).
    cap = min(cap, max(1, (4 * 2**20) // max(1, hp * lpad(w_in) * itemsize)))
    cap = min(cap, n_planes)
    if n_planes >= 4:
        cap = min(cap, -(-n_planes // 4))                   # >= 4 grid steps (>= 2 / TC on v7x)
    cap = max(cap, 1)

    mult = 8 // math.gcd(8, h_in)                           # keep bb*h_in a multiple of 8
    best = 0
    d = min(cap, n_planes)
    while d >= 1:                                           # prefer a divisor of N*C: no padding
        if n_planes % d == 0 and (d % mult == 0 or d == n_planes):
            best = d
            break
        d -= 1
    if best and 2 * best >= cap:
        return best, vmem_limit
    return max(mult, (cap // mult) * mult), vmem_limit      # rare: pad planes up


def interpolate(x: jnp.ndarray,
                scale_factor: float = SCALE_FACTOR,
                mode: str = MODE,
                align_corners: bool = ALIGN_CORNERS) -> jnp.ndarray:
    """Bilinear 2x upsampling of an NCHW tensor; hot path in one Pallas kernel."""
    assert mode == "bilinear" and not align_corners, "only bilinear / half-pixel supported"
    assert float(scale_factor) == 2.0, "kernel is specialized to scale_factor=2.0"
    assert jnp.issubdtype(x.dtype, jnp.floating), "floating-point input expected"

    n, c, h_in, w_in = x.shape
    h_out = int(math.floor(h_in * scale_factor))            # recompute_scale_factor=True
    w_out = int(math.floor(w_in * scale_factor))

    n_planes = n * c
    bb, vmem_limit = _pick_batch_planes(n_planes, h_in, w_in, w_out, x.dtype.itemsize)
    p_pad = -(-n_planes // bb) * bb
    grid = p_pad // bb
    m = bb * h_in

    # Folded 2-D views (contiguous, metadata-only reshapes outside the kernel).
    x2 = x.reshape(n_planes * h_in, w_in)
    if p_pad != n_planes:
        # TODO(synk): rare fallback; a masked last block would avoid this copy.
        x2 = jnp.pad(x2, ((0, (p_pad - n_planes) * h_in), (0, 0)))

    ww_t = _linear_matrix_t(w_in, w_out, jnp.float32)                 # (W_in, W_out)
    hcoef = jnp.asarray(np.tile(_h_coef_columns(h_in), (bb, 1)))      # (bb*H_in, 2) f32

    out2 = pl.pallas_call(
        _interp_kernel,
        out_shape=jax.ShapeDtypeStruct((p_pad * h_in, 2 * w_out), x.dtype),
        grid_spec=pltpu.PrefetchScalarGridSpec(
            num_scalar_prefetch=0,
            grid=(grid,),
            in_specs=[
                pl.BlockSpec((w_in, w_out), lambda b: (0, 0)),        # ww_t   (constant)
                pl.BlockSpec((m, 2), lambda b: (0, 0)),               # hcoef  (constant)
                pl.BlockSpec((m, w_in), lambda b: (b, 0)),            # x      (streamed)
            ],
            out_specs=pl.BlockSpec((m, 2 * w_out), lambda b: (b, 0)),
        ),
        compiler_params=pltpu.CompilerParams(
            dimension_semantics=("parallel",),
            vmem_limit_bytes=vmem_limit),
    )(ww_t, hcoef, x2)

    if p_pad != n_planes:
        out2 = out2[: n_planes * h_in]
    return out2.reshape(n, c, h_out, w_out)


if __name__ == "__main__":
    key = jax.random.PRNGKey(0)
    x = jax.random.normal(key, (2, 4, 16, 16), dtype=jnp.float32)     # NCHW
    out = jax.block_until_ready(interpolate(x))
    assert out.shape == (2, 4, 32, 32), out.shape

    # Cross-check against the exact PyTorch tap formula (general construction,
    # independent of the in-kernel scale-2 specialization).
    x_np = np.asarray(x, dtype=np.float32)
    i0, i1, a0, a1 = _linear_taps(16, 32)
    t_np = (a0[None, None, :, None] * x_np[:, :, i0, :] +
            a1[None, None, :, None] * x_np[:, :, i1, :])
    j0, j1, b0, b1 = _linear_taps(16, 32)
    ref = (b0[None, None, None, :] * t_np[:, :, :, j0] +
           b1[None, None, None, :] * t_np[:, :, :, j1])
    assert np.allclose(np.asarray(out), ref, atol=1e-4, rtol=1e-4), \
        float(np.max(np.abs(np.asarray(out) - ref)))
    print("KERNEL_OK")
</pallas_src>

<mosaic_0001>
module attributes {stable_mosaic.version = 11 : i64} {
  func.func @_interp_kernel(%arg0: i32, %arg1: memref<16x32xf32, #tpu.memory_space<vmem>>, %arg2: memref<32x2xf32, #tpu.memory_space<vmem>>, %arg3: memref<32x16xf32, #tpu.memory_space<vmem>>, %arg4: memref<32x64xf32, #tpu.memory_space<vmem>>) attributes {dimension_semantics = [#tpu.dimension_semantics<parallel>], iteration_bounds = array<i64: 4>, scalar_prefetch = 0 : i64, scratch_operands = 0 : i64, tpu.core_type = #tpu.core_type<tc>, window_params = [{pipeline_mode = #tpu.pipeline_mode<synchronous>, transform_indices = @transform_0, window_bounds = array<i64: 16, 32>}, {pipeline_mode = #tpu.pipeline_mode<synchronous>, transform_indices = @transform_1, window_bounds = array<i64: 32, 2>}, {transform_indices = @transform_2, window_bounds = array<i64: 32, 16>}, {transform_indices = @transform_3, window_bounds = array<i64: 32, 64>}]} {
    %c0 = arith.constant 0 : index
    %c0_0 = arith.constant 0 : index
    %0 = vector.load %arg3[%c0, %c0_0] : memref<32x16xf32, #tpu.memory_space<vmem>>, vector<32x16xf32>
    %1 = vector.extract_strided_slice %0 {offsets = [0, 0], sizes = [1, 16], strides = [1, 1]} : vector<32x16xf32> to vector<1x16xf32>
    %2 = vector.extract_strided_slice %0 {offsets = [0, 0], sizes = [31, 16], strides = [1, 1]} : vector<32x16xf32> to vector<31x16xf32>
    %3 = tpu.concatenate %1, %2 in 0 : vector<1x16xf32>, vector<31x16xf32> -> vector<32x16xf32>
    %4 = vector.extract_strided_slice %0 {offsets = [1, 0], sizes = [31, 16], strides = [1, 1]} : vector<32x16xf32> to vector<31x16xf32>
    %5 = vector.extract_strided_slice %0 {offsets = [31, 0], sizes = [1, 16], strides = [1, 1]} : vector<32x16xf32> to vector<1x16xf32>
    %6 = tpu.concatenate %4, %5 in 0 : vector<31x16xf32>, vector<1x16xf32> -> vector<32x16xf32>
    %c0_1 = arith.constant 0 : index
    %c0_2 = arith.constant 0 : index
    %7 = vector.load %arg2[%c0_1, %c0_2] : memref<32x2xf32, #tpu.memory_space<vmem>>, vector<32x1xf32>
    %c0_3 = arith.constant 0 : index
    %c1 = arith.constant 1 : index
    %8 = vector.load %arg2[%c0_3, %c1] : memref<32x2xf32, #tpu.memory_space<vmem>>, vector<32x1xf32>
    %9 = arith.subf %3, %0 : vector<32x16xf32>
    %10 = vector.broadcast %7 : vector<32x1xf32> to vector<32x16xf32>
    %11 = arith.mulf %10, %9 : vector<32x16xf32>
    %12 = arith.addf %0, %11 : vector<32x16xf32>
    %13 = arith.subf %6, %0 : vector<32x16xf32>
    %14 = vector.broadcast %8 : vector<32x1xf32> to vector<32x16xf32>
    %15 = arith.mulf %14, %13 : vector<32x16xf32>
    %16 = arith.addf %0, %15 : vector<32x16xf32>
    %c0_4 = arith.constant 0 : index
    %c0_5 = arith.constant 0 : index
    %17 = vector.load %arg1[%c0_4, %c0_5] : memref<16x32xf32, #tpu.memory_space<vmem>>, vector<16x32xf32>
    %cst = arith.constant dense<0.000000e+00> : vector<32x32xf32>
    %18 = tpu.matmul %12, %17, %cst {dimension_numbers = #tpu.dot_dimension_numbers<[1], [0], [0], [1], [0, 0, 1, 1], [], []>} : vector<32x16xf32>, vector<16x32xf32>, vector<32x32xf32> -> vector<32x32xf32>
    %cst_6 = arith.constant dense<0.000000e+00> : vector<32x32xf32>
    %19 = tpu.matmul %16, %17, %cst_6 {dimension_numbers = #tpu.dot_dimension_numbers<[1], [0], [0], [1], [0, 0, 1, 1], [], []>} : vector<32x16xf32>, vector<16x32xf32>, vector<32x32xf32> -> vector<32x32xf32>
    %c0_7 = arith.constant 0 : index
    %c0_8 = arith.constant 0 : index
    %20 = vector.load %arg4[%c0_7, %c0_8] : memref<32x64xf32, #tpu.memory_space<vmem>>, vector<32x32xf32>
    tpu.vector_store %arg4[%c0_7, %c0_8], %18 {strides = array<i32>} : memref<32x64xf32, #tpu.memory_space<vmem>>, vector<32x32xf32>,
    %c0_9 = arith.constant 0 : index
    %c32 = arith.constant 32 : index
    %21 = vector.load %arg4[%c0_9, %c32] : memref<32x64xf32, #tpu.memory_space<vmem>>, vector<32x32xf32>
    tpu.vector_store %arg4[%c0_9, %c32], %19 {strides = array<i32>} : memref<32x64xf32, #tpu.memory_space<vmem>>, vector<32x32xf32>,
    return
  }
  func.func @transform_0(%arg0: i32) -> (i32, i32) {
    %c0_i32 = arith.constant 0 : i32
    %c0_i32_0 = arith.constant 0 : i32
    %c0_i32_1 = arith.constant 0 : i32
    return %c0_i32, %c0_i32_0 : i32, i32
  }
  func.func @transform_1(%arg0: i32) -> (i32, i32) {
    %c0_i32 = arith.constant 0 : i32
    %c0_i32_0 = arith.constant 0 : i32
    %c0_i32_1 = arith.constant 0 : i32
    return %c0_i32, %c0_i32_0 : i32, i32
  }
  func.func @transform_2(%arg0: i32) -> (i32, i32) {
    %c0_i32 = arith.constant 0 : i32
    %c0_i32_0 = arith.constant 0 : i32
    return %arg0, %c0_i32 : i32, i32
  }
  func.func @transform_3(%arg0: i32) -> (i32, i32) {
    %c0_i32 = arith.constant 0 : i32
    %c0_i32_0 = arith.constant 0 : i32
    return %arg0, %c0_i32 : i32, i32
  }
}

</mosaic_0001>

<bundles_post_ra>
// kernel: tpu_custom_call.1
= control target key start
LH: loop header
LB: loop body
LE: loop exit
PB: predicated region body
PF: predicated region fallthrough
CT: control target
= control target key end

     0   :  { %s510_s12 = smov 0   ;;  %s572_s0 = inlined_call_operand.vmem [shape: f32[16,32], index: 0, kind: input, shape index: {}]   ;;  %s573_s1 = inlined_call_operand.vmem [shape: f32[32,2], index: 1, kind: input, shape index: {}]   ;;  %s574_s2 = inlined_call_operand.vmem [shape: f32[128,16], index: 2, kind: input, shape index: {}]   ;;  %s575_s3 = inlined_call_operand.vmem [shape: f32[128,64], index: 3, kind: output, shape index: {}]  }
   0x1 LB: > { %s439_s13 = sadd.s32 4294967295, %s485_s12   ;;  %p443_p0 = scmp.ge.s32.totalorder %s485_s12, 1  ;;  %s485_s12 = sphi %s510_s12, %s13_s12  }
   0x2   : > { %p138_p1 = scmp.lt.s32.totalorder %s485_s12, 5 }
   0x4   : > { %p139_p2 = pnand %p443_p0, %p138_p1 }
   0x5   : > { %s444_s24 = sshll.u32 (!%p139_p2), %s439_s13, 2  ;;  %s489_s7 = smov (!%p139_p2), 32  }
   0x6   : > { %142 = sbr.rel (%p139_p2) target bundleno = 390 (0x186), region = 32  ;;  %p163_p3 = scmp.lt.s32.totalorder (!%p139_p2), %s444_s24, 15 }
   0xb   : > { %v211_v0 = vld [vmem:[%s573_s1 + $0x18] sm:$0xff]  ;;  %v210_v1 = vld [vmem:[%s573_s1 + $0x10] sm:$0xff]  ;;  %v487_v2 = vmov 1   ;;  %v488_v3 = vmov 0   ;;  %v209_v4 = vld [vmem:[%s573_s1 + $0x8] sm:$0xff]  ;;  %s577_s24 = smov (!%p163_p3, %s444_s24), 15 }
   0xc   : > { %474 = vset.pattern.permute.xlu1 %v487_v2  ;;  %473 = vset.pattern.permute.xlu0 %v487_v2  ;;  %v208_v5 = vld [vmem:[%s573_s1] sm:$0xff]  ;;  %v273_v6 = vld [vmem:[%s572_s0 + $0x8] sm:$0xff]  ;;  %s445_s27 = sshll.u32 %s577_s24, 3  ;;  %vm182_vm0 = vcmask 1040384   ;;  %vm195_vm1 = vcmask 1046528   ;;  %vm274_vm2 = vcmask 130048  }
   0xd   : > { %261 = vperm.xlu1 %474, %v211_v0   ;;  %257 = vperm.xlu0 %473, %v210_v1   ;;  %v272_v7 = vld [vmem:[%s572_s0] sm:$0xff]  ;;  %s166_s30 = scalar_lea.vmem %s574_s2, %s445_s27  ;;  %s172_s6 = scalar_lea.vmem %s575_s3, %s445_s27  ;;  %vm357_vm3 = vcmask 261120   ;;  %vm378_vm4 = vcmask 523520  }
   0xe   : > { %475 = vset.pattern.permute.xlu2 %v488_v3  ;;  %460 = vmatpush.msra.mxu3 %v273_v6  ;;  %v177_v8 = vld [vmem:[%s166_s30 + $0x18] sm:$0xff]  ;;  %v176_v9 = vld [vmem:[%s166_s30 + $0x10] sm:$0xff]  ;;  %v175_v10 = vld [vmem:[%s166_s30 + $0x8] sm:$0xff] }
   0xf   : > { %228 = vperm.xlu2 %475, %v210_v1   ;;  %342 = vmatpush.msra.mxu1 %v273_v6  ;;  %v174_v11 = vld [vmem:[%s166_s30] sm:$0xff]  ;;  %v184_v13 = vrot.slane %v175_v10, 7  ;;  %v186_v14 = vrot.slane %v176_v9, 7  ;;  %v201_v16 = vrot.slane %v177_v8, 1  ;;  %v199_v17 = vrot.slane %v176_v9, 1 }
  0x10   : > { %301 = vmatpush.msra.mxu0 %v273_v6  ;;  %458 = vmatpush.msra.mxu2 %v273_v6  ;;  %v183_v15 = vrot.slane %v174_v11, 7  ;;  %v197_v28 = vrot.slane %v175_v10, 1  ;;  %v196_v29 = vrot.slane %v174_v11, 1  ;;  %v188_v40 = vrot.slane %v177_v8, 7 }
  0x11   : > { %461 = vmatpush.msra.mxu3 %v272_v7  ;;  %343 = vmatpush.msra.mxu1 %v272_v7  ;;  %v187_v18 = vsel %vm182_vm0, %v184_v13, %v186_v14  ;;  %v202_v21 = vsel %vm195_vm1, %v199_v17, %v201_v16  ;;  %v207_v27 = vsel %vm195_vm1, %v201_v16, %v177_v8 }
  0x12   : > { %302 = vmatpush.msra.mxu0 %v272_v7  ;;  %459 = vmatpush.msra.mxu2 %v272_v7  ;;  %v194_v19 = vsel %vm182_vm0, %v174_v11, %v183_v15  ;;  %v214_v20 = vsub.f32 %v187_v18, %v176_v9  ;;  %v246_v25 = vsub.f32 %v202_v21, %v176_v9 }
  0x13   : > { %v212_v23 = vsub.f32 %v194_v19, %v174_v11  ;;  %v247_v34 = vsub.f32 %v207_v27, %v177_v8  ;;  %v198_v36 = vsel %vm195_vm1, %v196_v29, %v197_v28  ;;  %v200_v41 = vsel %vm195_vm1, %v197_v28, %v199_v17 }
  0x14   : > { %v244_v39 = vsub.f32 %v198_v36, %v174_v11  ;;  %v245_v46 = vsub.f32 %v200_v41, %v175_v10  ;;  %v189_v48 = vsel %vm182_vm0, %v186_v14, %v188_v40  ;;  %v185_v49 = vsel %vm182_vm0, %v183_v15, %v184_v13 }
  0x15   : > { %253 = vperm.xlu1 %474, %v209_v4   ;;  %249 = vperm.xlu0 %473, %v208_v5   ;;  %v215_v50 = vsub.f32 %v189_v48, %v177_v8  ;;  %v213_v51 = vsub.f32 %v185_v49, %v175_v10 }
  0x17   : > { %218 = vperm.xlu2 %475, %v208_v5  }
  0x1d   : > { %476 = vset.pattern.permute.xlu0 %v488_v3  ;;  %477 = vset.pattern.permute.xlu1 %v488_v3 }
  0x1e   : > { %233 = vperm.xlu0 %476, %v211_v0   ;;  %223 = vperm.xlu1 %477, %v209_v4  }
  0x26   : > { %478 = vset.pattern.permute.xlu0 %v487_v2 }
  0x69   : > { %v229_v12 = vpop.permute.xlu2 %228 }
  0x6a   : > { %v238_v22 = vmul.f32 %v229_v12, %v214_v20 }
  0x6c   : > { %v242_v24 = vadd.f32 %v238_v22, %v176_v9 }
  0x6e   : > { %450 = vmatmul.msk.f32.vlgmr.msra.gmra.mxu2 %vm274_vm2, %v242_v24 }
  0x71   : > { %v219_v26 = vpop.permute.xlu2 %218 }
  0x72   : > { %v236_v30 = vmul.f32 %v219_v26, %v212_v23 }
  0x74   : > { %v240_v33 = vadd.f32 %v236_v30, %v174_v11 }
  0x76   : > { %448 = vmatmul.msk.f32.vlgmr.msra.gmra.mxu0 %vm274_vm2, %v240_v33 }
  0x7f   : > { %v262_v31 = vpop.permute.xlu1 %261  ;;  %v258_v32 = vpop.permute.xlu0 %257 }
  0x80   : > { %v266_v35 = vmul.f32 %v258_v32, %v246_v25  ;;  %v267_v38 = vmul.f32 %v262_v31, %v247_v34 }
  0x82   : > { %v270_v37 = vadd.f32 %v266_v35, %v176_v9  ;;  %v271_v43 = vadd.f32 %v267_v38, %v177_v8 }
  0x84   : > { %454 = vmatmul.msk.f32.vlgmr.msra.gmra.mxu3 %vm274_vm2, %v270_v37 }
  0x87   : > { %v250_v42 = vpop.permute.xlu0 %249  ;;  %v254_v44 = vpop.permute.xlu1 %253 }
  0x88   : > { %v264_v45 = vmul.f32 %v250_v42, %v244_v39  ;;  %v265_v52 = vmul.f32 %v254_v44, %v245_v46 }
  0x8a   : > { %v268_v47 = vadd.f32 %v264_v45, %v174_v11  ;;  %v269_v57 = vadd.f32 %v265_v52, %v175_v10 }
  0x8c   : > { %452 = vmatmul.msk.f32.vlgmr.msra.gmra.mxu1 %vm274_vm2, %v268_v47  ;;  %455 = vmatmul.msk.f32.gmra.mxu3 %vm274_vm2, %v271_v43 }
  0x90   : > { %v234_v53 = vpop.permute.xlu0 %233  ;;  %v224_v54 = vpop.permute.xlu1 %223 }
  0x91   : > { %v239_v55 = vmul.f32 %v234_v53, %v215_v50  ;;  %v237_v56 = vmul.f32 %v224_v54, %v213_v51 }
  0x93   : > { %v243_v58 = vadd.f32 %v239_v55, %v177_v8  ;;  %v241_v59 = vadd.f32 %v237_v56, %v175_v10 }
  0x94   : > { %453 = vmatmul.msk.f32.gmra.mxu1 %vm274_vm2, %v269_v57 }
  0x95   : > { %451 = vmatmul.msk.f32.gmra.mxu2 %vm274_vm2, %v243_v58  ;;  %449 = vmatmul.msk.f32.gmra.mxu0 %vm274_vm2, %v241_v59 }
  0xf1   : > { %v310_v1 = vpop.f32.mrf.mxu2 }
  0xf2   : > { %360 = vst.msk [vmem:[%s172_s6 + $0x10] sm:$0xff] %vm357_vm3, %v310_v1 }
  0xf3   : > { %v304_v60 = vpop.f32.mrf.mxu0 }
  0xf4   : > { %358 = vst.msk [vmem:[%s172_s6] sm:$0xff] %vm357_vm3, %v304_v60 }
 0x107   : > { %v351_v61 = vpop.f32.mrf.mxu3 }
 0x109   : > { %v345_v62 = vpop.f32.mrf.mxu1 }
 0x10a   : > { %366 = vrot.lane.b32.xlu2 %v345_v62, %s489_s7 }
 0x10f   : > { %v354_v63 = vpop.f32.mrf.mxu3 }
 0x110   : > { %372 = vrot.lane.b32.xlu0 %v354_v63, %s489_s7 }
 0x111   : > { %v348_v0 = vpop.f32.mrf.mxu1 }
 0x112   : > { %370 = vrot.lane.b32.xlu2 %v351_v61, %s489_s7  ;;  %368 = vrot.lane.b32.xlu1 %v348_v0, %s489_s7  ;;  %v307_v3 = vpop.f32.mrf.mxu0 }
 0x113   : > { %359 = vst.msk [vmem:[%s172_s6 + $0x8] sm:$0xff] %vm357_vm3, %v307_v3 }
 0x118   : > { %v313_v2 = vpop.f32.mrf.mxu2 }
 0x119   : > { %361 = vst.msk [vmem:[%s172_s6 + $0x18] sm:$0xff] %vm357_vm3, %v313_v2 }
 0x164   : > { %v367_v4 = vpop.permute.xlu2 %366 }
 0x165   : > { %379 = vst.msk [vmem:[%s172_s6] sm:$0xff] %vm378_vm4, %v367_v4 }
 0x16c   : > { %v371_v5 = vpop.permute.xlu2 %370 }
 0x16d   : > { %381 = vst.msk [vmem:[%s172_s6 + $0x10] sm:$0xff] %vm378_vm4, %v371_v5 }
 0x182   : > { %v373_v6 = vpop.permute.xlu0 %372 }
 0x183   : > { %382 = vst.msk [vmem:[%s172_s6 + $0x18] sm:$0xff] %vm378_vm4, %v373_v6 }
 0x184   : > { %v369_v7 = vpop.permute.xlu1 %368 }
 0x185   : > { %380 = vst.msk [vmem:[%s172_s6 + $0x8] sm:$0xff] %vm378_vm4, %v369_v7 }
 0x186 PF: > { %s13_s12 = sadd.s32 1, %s485_s12  }
 0x187   : > { %p10_p4 = scmp.ge.s32.totalorder %s13_s12, 6  }
 0x189   :  { %12 = sbr.rel (!%p10_p4) target bundleno = 1 (0x1), region = 62 }

</bundles_post_ra>
